<compile_context>
chip_gen: v5e
topology: v5e:2x2
jax: 0.10.0
libtpu: 0.0.40
codegen_flags: <defaults>
</compile_context>

<pallas_src>
import functools

import jax
import jax.numpy as jnp
from jax import lax
from jax.experimental import pallas as pl
from jax.experimental.pallas import tpu as pltpu


def _focal_kernel(*refs, gamma, smooth, num_class, hw, tile_pixels,
                  need_mask, has_alpha):
    if has_alpha:
        logit_ref, target_ref, alpha_ref, out_ref, acc_ref = refs
    else:
        logit_ref, target_ref, out_ref, acc_ref = refs
        alpha_ref = None

    j = pl.program_id(1)  # pixel-tile index within the current image

    @pl.when(j == 0)
    def _():
        acc_ref[...] = jnp.zeros_like(acc_ref)

    probs = logit_ref[...]                                   # (C, TL) f32
    tgt = target_ref[...].astype(jnp.int32)                  # (1, TL) widen in-kernel

    # one-hot via sublane iota compare (classes on sublanes, pixels on lanes)
    classes = lax.broadcasted_iota(jnp.int32, probs.shape, 0)
    one_hot = classes == tgt                                 # (C, TL) bool

    # label smoothing: clip(one_hot, lo, hi) == where(one_hot, hi, lo)
    lo = smooth / (num_class - 1) if num_class > 1 else smooth
    hi = 1.0 - smooth
    w = jnp.where(one_hot, jnp.float32(hi), jnp.float32(lo))

    # pt = sum_c clip(one_hot) * p  + smooth   (one reduce across the class sublanes)
    pt = jnp.sum(w * probs, axis=0, keepdims=True) + jnp.float32(smooth)   # (1, TL)
    logpt = jnp.log(pt)
    one_minus = 1.0 - pt

    # gamma == 2 -> plain square on the VPU (no exp/log pow, no NaN for tiny negatives)
    if gamma == 2.0:
        focal = jnp.square(one_minus)
    elif float(gamma).is_integer():
        focal = lax.integer_pow(one_minus, int(gamma))
    else:
        focal = jnp.power(one_minus, jnp.float32(gamma))

    loss = -(focal * logpt)                                  # (1, TL)

    if has_alpha:
        alpha_row = jnp.sum(jnp.where(one_hot, alpha_ref[...], 0.0),
                            axis=0, keepdims=True)           # alpha[target]
        loss = alpha_row * loss

    if need_mask:  # last pixel tile may run past HW; zero the invalid lanes
        col = j * tile_pixels + lax.broadcasted_iota(jnp.int32, loss.shape, 1)
        loss = jnp.where(col < hw, loss, 0.0)

    # vector partial accumulation (pure VPU add per step; no per-step XLU reduce)
    acc_ref[...] += loss

    @pl.when(j == pl.num_programs(1) - 1)
    def _():
        out_ref[...] = jnp.sum(acc_ref[...], keepdims=True)  # one reduce per image


def focal_loss_v2(logit_nchw, target, *, alpha=None, gamma=2.0, balance_index=0,
                  smooth=1e-5, size_average=True, tile_bytes=2 * 1024 * 1024):
    """logit_nchw: [N, C, H, W] float (already probabilities; apply_nonlin=None).
       target:     [N, 1, H, W] (or [N, H, W]) integer class indices (any int dtype;
                   pass int8 when C <= 127 to minimize HBM traffic)."""
    if smooth is not None and (smooth < 0 or smooth > 1.0):
        raise ValueError('smooth value should be in [0,1]')
    smooth = 0.0 if smooth is None else float(smooth)

    n, c, h, w = logit_nchw.shape
    hw = h * w
    m = n * hw

    # Pure views of the native layout — no transpose, no extra HBM pass.
    logit_3d = logit_nchw.reshape(n, c, hw).astype(jnp.float32)
    target_3d = jnp.reshape(target, (n, 1, hw))
    if not jnp.issubdtype(target_3d.dtype, jnp.integer):
        target_3d = target_3d.astype(jnp.int32)

    # alpha handling mirroring the PyTorch module (alpha=None path is specialized:
    # no alpha input, no per-pixel gather in the kernel).
    if alpha is None:
        alpha_col = None
    elif isinstance(alpha, float):
        alpha_col = jnp.full((c,), 1.0 - alpha, jnp.float32).at[balance_index].set(alpha)
        alpha_col = alpha_col.reshape(c, 1)
    else:
        alpha_col = jnp.asarray(alpha, jnp.float32).reshape(c)
        alpha_col = (alpha_col / jnp.sum(alpha_col)).reshape(c, 1)
    has_alpha = alpha_col is not None

    # Pixel-tile size: large, lane-aligned, sized against the smallest (v7x) VMEM budget
    # (~2 MiB of logits per buffer; double-buffered this stays well under the scoped limit).
    tl_cap = max(128, (int(tile_bytes) // (4 * c)) // 128 * 128)
    if hw <= tl_cap:
        tl = hw                      # full extent (always legal, even if not %128)
        n_tiles = 1
        need_mask = False
    else:
        tl = tl_cap                  # multiple of 128
        n_tiles = pl.cdiv(hw, tl)
        need_mask = (hw % tl) != 0   # mask the ragged tail instead of asserting

    kernel = functools.partial(
        _focal_kernel,
        gamma=float(gamma), smooth=smooth, num_class=c, hw=hw,
        tile_pixels=tl, need_mask=need_mask, has_alpha=has_alpha)

    in_specs = [
        pl.BlockSpec((None, c, tl), lambda i, j: (i, 0, j)),   # logits tile (C, TL)
        pl.BlockSpec((None, 1, tl), lambda i, j: (i, 0, j)),   # target tile (1, TL)
    ]
    inputs = [logit_3d, target_3d]
    if has_alpha:
        in_specs.append(pl.BlockSpec((c, 1), lambda i, j: (0, 0)))  # resident alpha
        inputs.append(alpha_col)

    partials = pl.pallas_call(
        kernel,
        out_shape=jax.ShapeDtypeStruct((n, 1, 1), jnp.float32),   # one partial per image
        grid_spec=pltpu.PrefetchScalarGridSpec(
            num_scalar_prefetch=0,
            grid=(n, n_tiles),
            in_specs=in_specs,
            out_specs=pl.BlockSpec((None, 1, 1), lambda i, j: (i, 0, 0)),
            scratch_shapes=[pltpu.VMEM((1, tl), jnp.float32)],    # vector accumulator
        ),
        compiler_params=pltpu.CompilerParams(
            dimension_semantics=("parallel", "arbitrary"),
        ),
    )(*inputs)

    total = jnp.sum(partials)        # N tiny partials; negligible XLA work
    if size_average:
        total = total / jnp.float32(m)
    return total


def _focal_loss_ref(logit_nchw, target, gamma=2.0, smooth=1e-5, size_average=True):
    """Pure-JAX reference mirroring the PyTorch forward (alpha=None)."""
    n, c, h, w = logit_nchw.shape
    logit = jnp.transpose(logit_nchw, (0, 2, 3, 1)).reshape(-1, c).astype(jnp.float32)
    tgt = jnp.reshape(target, (-1,)).astype(jnp.int32)
    one_hot = jax.nn.one_hot(tgt, c, dtype=jnp.float32)
    one_hot = jnp.clip(one_hot, smooth / (c - 1), 1.0 - smooth)
    pt = jnp.sum(one_hot * logit, axis=1) + smooth
    logpt = jnp.log(pt)
    loss = -jnp.power(1.0 - pt, gamma) * logpt
    return jnp.mean(loss) if size_average else jnp.sum(loss)


if __name__ == "__main__":
    key = jax.random.PRNGKey(0)
    k1, k2 = jax.random.split(key)

    N, C, H, W = 2, 4, 16, 16
    # Probability-like logits (module is normally fed softmax output; apply_nonlin=None
    # means the kernel consumes them as-is).
    raw = jax.random.normal(k1, (N, C, H, W), dtype=jnp.float32)
    logit = jax.nn.softmax(raw, axis=1)
    # Class indices, kept 8-bit (C < 128) so the kernel streams 1 B/pixel of target.
    target = jax.random.randint(k2, (N, 1, H, W), 0, C, dtype=jnp.int32).astype(jnp.int8)

    loss = focal_loss_v2(logit, target, gamma=2.0, smooth=1e-5, size_average=True)
    loss = jax.block_until_ready(loss)

    ref = _focal_loss_ref(logit, target)
    assert jnp.allclose(loss, ref, rtol=1e-5, atol=1e-6), (loss, ref)

    print("KERNEL_OK")
</pallas_src>

<mosaic_0001>
module attributes {stable_mosaic.version = 11 : i64} {
  func.func @_focal_kernel(%arg0: i32, %arg1: i32, %arg2: memref<1x4x256xf32, #tpu.memory_space<vmem>>, %arg3: memref<1x1x256xi8, #tpu.memory_space<vmem>>, %arg4: memref<1x1x1xf32, #tpu.memory_space<vmem>>, %arg5: memref<1x256xf32, #tpu.memory_space<vmem>>) attributes {dimension_semantics = [#tpu.dimension_semantics<parallel>, #tpu.dimension_semantics<arbitrary>], iteration_bounds = array<i64: 2, 1>, scalar_prefetch = 0 : i64, scratch_operands = 1 : i64, tpu.core_type = #tpu.core_type<tc>, window_params = [{transform_indices = @transform_0, window_bounds = array<i64: 1, 4, 256>}, {transform_indices = @transform_1, window_bounds = array<i64: 1, 1, 256>}, {transform_indices = @transform_2, window_bounds = array<i64: 1, 1, 1>}]} {
    %c0_i32 = arith.constant 0 : i32
    %0 = arith.cmpi eq, %arg1, %c0_i32 : i32
    %1 = arith.extui %0 : i1 to i32
    %c0_i32_0 = arith.constant 0 : i32
    %2 = arith.cmpi ne, %1, %c0_i32_0 : i32
    scf.if %2 {
      %cst_17 = arith.constant 0.000000e+00 : f32
      %32 = vector.broadcast %cst_17 : f32 to vector<1x256xf32>
      %c0_18 = arith.constant 0 : index
      %c0_19 = arith.constant 0 : index
      %33 = vector.load %arg5[%c0_18, %c0_19] : memref<1x256xf32, #tpu.memory_space<vmem>>, vector<1x256xf32>
      tpu.vector_store %arg5[%c0_18, %c0_19], %32 {strides = array<i32>} : memref<1x256xf32, #tpu.memory_space<vmem>>, vector<1x256xf32>,
    } else {
    }
    %c0 = arith.constant 0 : index
    %c0_1 = arith.constant 0 : index
    %c0_2 = arith.constant 0 : index
    %3 = vector.load %arg2[%c0, %c0_1, %c0_2] : memref<1x4x256xf32, #tpu.memory_space<vmem>>, vector<1x4x256xf32>
    %4 = vector.shape_cast %3 : vector<1x4x256xf32> to vector<4x256xf32>
    %c0_3 = arith.constant 0 : index
    %c0_4 = arith.constant 0 : index
    %c0_5 = arith.constant 0 : index
    %5 = vector.load %arg3[%c0_3, %c0_4, %c0_5] : memref<1x1x256xi8, #tpu.memory_space<vmem>>, vector<1x1x256xi8>
    %6 = vector.shape_cast %5 : vector<1x1x256xi8> to vector<1x256xi8>
    %7 = arith.extsi %6 : vector<1x256xi8> to vector<1x256xi32>
    %8 = tpu.iota {dimensions = array<i32: 0>} : vector<4x256xi32>
    %9 = vector.broadcast %7 : vector<1x256xi32> to vector<4x256xi32>
    %10 = arith.cmpi eq, %8, %9 : vector<4x256xi32>
    %cst = arith.constant 0.999989986 : f32
    %cst_6 = arith.constant 3.33333332E-6 : f32
    %11 = vector.broadcast %cst : f32 to vector<4x256xf32>
    %12 = vector.broadcast %cst_6 : f32 to vector<4x256xf32>
    %13 = arith.select %10, %11, %12 : vector<4x256xi1>, vector<4x256xf32>
    %14 = arith.mulf %13, %4 : vector<4x256xf32>
    %cst_7 = arith.constant dense<0.000000e+00> : vector<256xf32>
    %15 = vector.multi_reduction <add>, %14, %cst_7 [0] : vector<4x256xf32> to vector<256xf32>
    %16 = vector.shape_cast %15 : vector<256xf32> to vector<1x256xf32>
    %cst_8 = arith.constant 9.99999974E-6 : f32
    %17 = vector.broadcast %cst_8 : f32 to vector<1x256xf32>
    %18 = arith.addf %16, %17 : vector<1x256xf32>
    %19 = math.log %18 : vector<1x256xf32>
    %cst_9 = arith.constant 1.000000e+00 : f32
    %20 = vector.broadcast %cst_9 : f32 to vector<1x256xf32>
    %21 = arith.subf %20, %18 : vector<1x256xf32>
    %22 = arith.mulf %21, %21 : vector<1x256xf32>
    %23 = arith.mulf %22, %19 : vector<1x256xf32>
    %cst_10 = arith.constant 0.000000e+00 : f32
    %24 = vector.broadcast %cst_10 : f32 to vector<1x256xf32>
    %25 = arith.subf %24, %23 : vector<1x256xf32>
    %c0_11 = arith.constant 0 : index
    %c0_12 = arith.constant 0 : index
    %26 = vector.load %arg5[%c0_11, %c0_12] : memref<1x256xf32, #tpu.memory_space<vmem>>, vector<1x256xf32>
    %27 = arith.addf %26, %25 : vector<1x256xf32>
    %c0_13 = arith.constant 0 : index
    %c0_14 = arith.constant 0 : index
    %28 = vector.load %arg5[%c0_13, %c0_14] : memref<1x256xf32, #tpu.memory_space<vmem>>, vector<1x256xf32>
    tpu.vector_store %arg5[%c0_13, %c0_14], %27 {strides = array<i32>} : memref<1x256xf32, #tpu.memory_space<vmem>>, vector<1x256xf32>,
    %c0_i32_15 = arith.constant 0 : i32
    %29 = arith.cmpi eq, %arg1, %c0_i32_15 : i32
    %30 = arith.extui %29 : i1 to i32
    %c0_i32_16 = arith.constant 0 : i32
    %31 = arith.cmpi ne, %30, %c0_i32_16 : i32
    scf.if %31 {
      %c0_17 = arith.constant 0 : index
      %c0_18 = arith.constant 0 : index
      %32 = vector.load %arg5[%c0_17, %c0_18] : memref<1x256xf32, #tpu.memory_space<vmem>>, vector<1x256xf32>
      %33 = vector.shape_cast %32 : vector<1x256xf32> to vector<1x1x256xf32>
      %cst_19 = arith.constant dense<0.000000e+00> : vector<1xf32>
      %34 = vector.multi_reduction <add>, %33, %cst_19 [1, 2] : vector<1x1x256xf32> to vector<1xf32>
      %35 = vector.shape_cast %34 : vector<1xf32> to vector<1x1x1xf32>
      %36 = vector.extract %35[0, 0, 0] : f32 from vector<1x1x1xf32>
      %37 = vector.broadcast %36 : f32 to vector<1x1xf32>
      %c0_20 = arith.constant 0 : index
      %c0_21 = arith.constant 0 : index
      %c0_22 = arith.constant 0 : index
      %38 = vector.load %arg4[%c0_20, %c0_21, %c0_22] : memref<1x1x1xf32, #tpu.memory_space<vmem>>, vector<1x1x1xf32>
      %39 = vector.shape_cast %38 : vector<1x1x1xf32> to vector<1x1xf32>
      %40 = vector.shape_cast %37 : vector<1x1xf32> to vector<1x1x1xf32>
      tpu.vector_store %arg4[%c0_20, %c0_21, %c0_22], %40 {strides = array<i32>} : memref<1x1x1xf32, #tpu.memory_space<vmem>>, vector<1x1x1xf32>,
    } else {
    }
    return
  }
  func.func @transform_0(%arg0: i32, %arg1: i32) -> (i32, i32, i32) {
    %c0_i32 = arith.constant 0 : i32
    %c0_i32_0 = arith.constant 0 : i32
    return %arg0, %c0_i32, %arg1 : i32, i32, i32
  }
  func.func @transform_1(%arg0: i32, %arg1: i32) -> (i32, i32, i32) {
    %c0_i32 = arith.constant 0 : i32
    %c0_i32_0 = arith.constant 0 : i32
    return %arg0, %c0_i32, %arg1 : i32, i32, i32
  }
  func.func @transform_2(%arg0: i32, %arg1: i32) -> (i32, i32, i32) {
    %c0_i32 = arith.constant 0 : i32
    %c0_i32_0 = arith.constant 0 : i32
    %c0_i32_1 = arith.constant 0 : i32
    return %arg0, %c0_i32, %c0_i32_0 : i32, i32, i32
  }
}

</mosaic_0001>

<bundles_post_ra>
// kernel: tpu_custom_call.1
= control target key start
LH: loop header
LB: loop body
LE: loop exit
PB: predicated region body
PF: predicated region fallthrough
CT: control target
= control target key end

     0   :  { %7 = vsyncpa [#allocation4], 0  ;;  %s669_s0 = inlined_call_operand.hbm [shape: f32[2,4,256], index: 0, kind: input, shape index: {}]   ;;  %s670_s1 = inlined_call_operand.vmem [shape: s8[2,1,256], index: 1, kind: input, shape index: {}]   ;;  %s671_s2 = inlined_call_operand.vmem [shape: f32[2,1,1], index: 2, kind: output, shape index: {}]  }
   0x1   :  { %9 = vsyncpa [#allocation4 + $0x1], 0  ;;  %s566_s9 = smov 0   ;;  %s568_s10 = smov 0  }
   0x2   :  { %s570_s11 = smov 0   ;;  %s572_s12 = smov 0  }
   0x3   :  { %s574_s13 = smov 0   ;;  %s576_s14 = smov 0  }
   0x4 LB: > { %s391_s15 = sadd.s32 4294967295, %s547_s14   ;;  %s27_s16 = sadd.s32 1, %s543_s13  ;;  %s547_s14 = sphi %s576_s14, %s15_s14   ;;  %s543_s13 = sphi %s574_s13, %s680_s13   ;;  %s539_s12 = sphi %s572_s12, %s679_s12   ;;  %s535_s11 = sphi %s570_s11, %s678_s11   ;;  %s531_s10 = sphi %s568_s10, %s677_s10   ;;  %s527_s9 = sphi %s566_s9, %s676_s9  }
   0x5   : > { %p29_p0 = scmp.ge.s32.totalorder %s27_s16, 2  ;;  %s36_s17 = sadd.s32 1, %s535_s11 }
   0x6   : > { %p43_p1 = scmp.ne.s32.totalorder %s535_s11, %s531_s10  ;;  %p44_p2 = scmp.eq.s32.totalorder %s547_s14, 0 }
   0x7   : > { %s682_s16 = smov (%p29_p0, %s27_s16), 0  ;;  %p49_p4 = scmp.ne.s32.totalorder %s531_s10, %s527_s9 }
   0x8   : > { %p602_p3 = por %p44_p2, %p43_p1  ;;  %s31_s19 = ssub.s32 %s543_s13, %s682_s16 }
   0x9   : > { %p50_p5 = scmp.eq.s32.totalorder %s391_s15, 0  ;;  %p34_p6 = scmp.eq.s32.totalorder %s31_s19, 0 }
   0xa   : > { %p412_p8 = scmp.lt.s32.totalorder %s547_s14, 2  ;;  %s127_s22 = sand.u32 1, %s535_s11  }
   0xb   : > { %p609_p7 = por %p50_p5, %p49_p4  ;;  %s403_s23 = sshll.u32 %s543_s13, 3 }
   0xc   : > { %s615_s21 = scalar_select %p34_p6, %s535_s11, %s36_s17  }
   0xd   : > { %s395_s24 = sshll.u32 %s127_s22, 3  ;;  %s138_s27 = scalar_lea.hbm %s669_s0, %s403_s23 }
   0xe   : > { %s140_s28 = sshll.u32 %s138_s27, 4  ;;  %s131_s29 = scalar_lea.vmem [#allocation3], %s395_s24  ;;  %s141_s28 = int_to_ptr.hbm [resolvable:$true] %s140_s28 }
   0xf   : > { %s142_s30 = sshll.u32 %s131_s29, 4  ;;  %p409_p9 = pnand %p412_p8, %p602_p3  ;;  %s143_s30 = int_to_ptr.vmem [resolvable:$true] %s142_s30 }
  0x10   : > { %p398_p10 = scmp.ge.s32.totalorder %s547_s14, 1  ;;  %p159_p11 = scmp.lt.s32.totalorder %s547_s14, 3 }
  0x11   : > { %s128_s3 = scalar_lea.sflag [#allocation4], %s127_s22 }
  0x12   : > { %411 = dma.hbm_to_vmem [thread:$0]  (!%p409_p9), %s141_s28, 128, %s143_s30, %s128_s3  }
  0x13   : > { %p160_p12 = pnand %p398_p10, %p159_p11 }
  0x14   : > { %s165_s4 = sand.u32 (!%p160_p12), 1, %s531_s10  }
  0x15   : > { %163 = sbr.rel (%p160_p12) target bundleno = 270 (0x10e), region = 28  ;;  %s399_s5 = sshll.u32 (!%p160_p12), %s165_s4, 3 }
  0x16   : > { %s166_s6 = scalar_lea.sflag (!%p160_p12), [#allocation4], %s165_s4  ;;  %s169_s7 = scalar_lea.vmem (!%p160_p12), [#allocation3], %s399_s5 }
  0x1a   : > { %522 = dma.done.wait (%p609_p7), %s166_s6, 128  }
  0x1b   : > { %524 = vsyncadd (%p609_p7), %s166_s6, 4294967168  ;;  %p199_p13 = scmp.lt.s32.totalorder %s539_s12, 1  ;;  %v214_v0 = vlaneseq  ;;  %v549_v2 = vmov 0.0   ;;  %v219_v3 = vld [vmem:[%s169_s7] sm:$0xff]  ;;  %v550_v11 = vmov 3.3333333e-06  }
  0x1c   : > { %233 = vst [vmem:[#allocation1] ss:$2 sm:$0xff] %v219_v3  ;;  %vm240_vm3 = vcmask 1043456   ;;  %vm273_vm4 = vcmask 1040384   ;;  %vm304_vm5 = vcmask 0  }
  0x1d   : > { %s684_s12 = smov (!%p199_p13, %s539_s12), 1  ;;  %vm635_vm0 = vcmp.lt.s32.totalorder %v214_v0, 256  ;;  %v223_v6 = vshrl.u32 %v214_v0, 7 }
  0x1e   : > { %218 = vst.msk [vmem:[#allocation2] sm:$0x3] %vm635_vm0, %v549_v2  ;;  %s400_s8 = sshll.u32 %s684_s12, 1  ;;  %s209_s20 = scalar_lea.vmem %s671_s2, %s684_s12 }
  0x1f   : > { %s205_s17 = scalar_lea.vmem %s670_s1, %s400_s8 }
  0x20   : > { %v220_v4 = vld [vmem:[%s205_s17] sm:$0x3] }
  0x21   : > { %v221_v5 = vunpack.c.0.s8 %v220_v4 }
  0x23   : > { %v224_v7 = vperm.slane %v221_v5, 0  ;;  %v225_v8 = vperm.slane %v221_v5, 4  ;;  %v234_v14 = vld.sshfl [vmem:[#allocation1] sm:$0xff pattern:$0x75316420] }
  0x24   : > { %v235_v15 = vld.sshfl [vmem:[#allocation1 + $0x8] sm:$0xff pattern:$0x75316420] }
  0x25   : > { %v226_v9 = vperm.slane %v224_v7, 0  ;;  %v227_v10 = vperm.slane %v225_v8, 0  ;;  %v269_v46 = vld [vmem:[#allocation2] sm:$0x3] }
  0x27   : > { %vm228_vm1 = vcmp.eq.s32.totalorder %v223_v6, %v226_v9  ;;  %vm229_vm2 = vcmp.eq.s32.totalorder %v223_v6, %v227_v10 }
  0x28   : > { %v230_v12 = vsel %vm228_vm1, 0.99999, %v550_v11  ;;  %v231_v13 = vsel %vm229_vm2, 0.99999, %v550_v11 }
  0x29   : > { %v238_v16 = vmul.f32 %v234_v14, %v230_v12  ;;  %v239_v17 = vmul.f32 %v235_v15, %v231_v13 }
  0x2b   : > { %v241_v18 = vsel %vm240_vm3, %v238_v16, 0.0  ;;  %v248_v19 = vsel %vm240_vm3, %v239_v17, 0.0 }
  0x2c   : > { %v242_v20 = vrot.slane %v241_v18, 4  ;;  %v249_v21 = vrot.slane %v248_v19, 4 }
  0x2e   : > { %v243_v22 = vadd.f32 %v242_v20, %v241_v18  ;;  %v250_v23 = vadd.f32 %v249_v21, %v248_v19 }
  0x30   : > { %v244_v24 = vrot.slane %v243_v22, 2  ;;  %v251_v25 = vrot.slane %v250_v23, 2 }
  0x32   : > { %v245_v26 = vadd.f32 %v244_v24, %v243_v22  ;;  %v252_v27 = vadd.f32 %v251_v25, %v250_v23 }
  0x34   : > { %v246_v28 = vrot.slane %v245_v26, 1  ;;  %v253_v29 = vrot.slane %v252_v27, 1 }
  0x36   : > { %v247_v30 = vadd.f32 %v246_v28, %v245_v26  ;;  %v254_v31 = vadd.f32 %v253_v29, %v252_v27 }
  0x38   : > { %v255_v32 = vadd.f32 1e-05, %v247_v30  ;;  %v256_v33 = vadd.f32 1e-05, %v254_v31 }
  0x3a   : > { %463 = vlog2.f32 %v255_v32  ;;  %v261_v34 = vsub.f32 1.0, %v255_v32  ;;  %v262_v35 = vsub.f32 1.0, %v256_v33 }
  0x3b   : > { %465 = vlog2.f32 %v256_v33 }
  0x3c   : > { %v263_v36 = vmul.f32 %v261_v34, %v261_v34  ;;  %v264_v38 = vmul.f32 %v262_v35, %v262_v35 }
  0x40   : > { %v464_v37 = vpop.eup %463 }
  0x41   : > { %v466_v39 = vpop.eup %465  ;;  %v258_v40 = vmul.f32 0.6931472, %v464_v37 }
  0x42   : > { %v260_v41 = vmul.f32 0.6931472, %v466_v39 }
  0x43   : > { %v265_v42 = vmul.f32 %v263_v36, %v258_v40 }
  0x44   : > { %v266_v43 = vmul.f32 %v264_v38, %v260_v41 }
  0x45   : > { %v267_v44 = vsub.f32 0.0, %v265_v42 }
  0x46   : > { %v268_v45 = vsub.f32 0.0, %v266_v43 }
  0x48   : > { %v272_v47 = vrot.slane %v268_v45, 7 }
  0x4a   : > { %v274_v48 = vsel %vm273_vm4, %v267_v44, %v272_v47 }
  0x4b   : > { %v276_v49 = vadd.f32 %v274_v48, %v269_v46 }
  0x4d   : > { %281 = vst.msk [vmem:[#allocation2] sm:$0x3] %vm635_vm0, %v276_v49 }
  0x54   : > { %v285_v50 = vld [vmem:[#allocation2] sm:$0x3] }
  0x55   : > { %v287_v51 = vperm.slane %v285_v50, 0  ;;  %v288_v52 = vperm.slane %v285_v50, 1 }
  0x57   : > { %v291_v53 = vsel %vm273_vm4, %v287_v51, 0.0  ;;  %v292_v54 = vsel %vm273_vm4, %v288_v52, 0.0 }
  0x58   : > { %v293_v55 = vadd.f32 %v292_v54, %v291_v53 }
  0x5a   : > { %294 = vadd.xlane.f32.xlu0 %v293_v55 }
  0xcd   : > { %v295_v56 = vpop.xlane.xlu0 %294 }
  0xce   : > { %v296_v57 = vrot.slane %v295_v56, 4 }
  0xd0   : > { %v297_v58 = vadd.f32 %v296_v57, %v295_v56 }
  0xd2   : > { %v298_v59 = vrot.slane %v297_v58, 2 }
  0xd4   : > { %v299_v60 = vadd.f32 %v298_v59, %v297_v58 }
  0xd6   : > { %v300_v61 = vrot.slane %v299_v60, 1 }
  0xd8   : > { %v301_v62 = vadd.f32 %v300_v61, %v299_v60 }
  0xda   : > { %404 = vpush %v301_v62 }
 0x10b   : > { %s405_s22 = spop %404 }
 0x10c   : > { %v303_v63 = vstv %s405_s22 }
 0x10d   : > { %305 = vst.msk [vmem:[%s209_s20] sm:$0x1] %vm304_vm5, %v303_v63 }
 0x10e PF: > { %s15_s14 = sadd.s32 1, %s547_s14   ;;  %s676_s9 = smov %s531_s10 }
 0x10f   : > { %p12_p0 = scmp.ge.s32.totalorder %s15_s14, 4   ;;  %s677_s10 = smov %s535_s11 }
 0x110   : > { %s678_s11 = smov %s615_s21  ;;  %s679_s12 = smov %s543_s13 }
 0x111   : > { %s680_s13 = smov %s682_s16  ;;  %14 = sbr.rel (!%p12_p0) target bundleno = 4 (0x4), region = 79 }
 0x116   :  { %323 = vsyncpa [#allocation4], 1 }
 0x117   :  { %325 = vsyncpa [#allocation4 + $0x1], 1 }

</bundles_post_ra>
